<compile_context>
chip_gen: v7x
topology: tpu7x:2x2x1
jax: 0.10.0
libtpu: 0.0.40
codegen_flags: <defaults>
</compile_context>

<pallas_src>
import math
from functools import partial

import jax
import jax.numpy as jnp
from jax.experimental import pallas as pl
from jax.experimental.pallas import tpu as pltpu

# ---- model hyper-parameters (small, consistent with the module) ------------
B = 2          # batch
S = 8          # sequence length of the input x
D = 32         # d_model (must be even)
MAX_LEN = 64   # positional-encoding buffer length (module default is 5000)


def make_pe(max_len, d_model):
    """Exactly mirrors the PyTorch __init__ buffer construction."""
    assert d_model % 2 == 0, "positional encoding requires an even d_model"
    position = jnp.arange(0, max_len, dtype=jnp.float32)[:, None]           # (L, 1)
    div_term = jnp.exp(
        jnp.arange(0, d_model, 2, dtype=jnp.float32)
        * (-math.log(10000.0) / d_model)
    )                                                                        # (D/2,)
    pe = jnp.zeros((max_len, d_model), jnp.float32)
    pe = pe.at[:, 0::2].set(jnp.sin(position * div_term))
    pe = pe.at[:, 1::2].set(jnp.cos(position * div_term))
    return pe[None, :, :]                                                    # (1, L, D)


def pe_add_kernel(x_ref, pe_ref, o_ref):
    # x_ref / o_ref : (bb, bs, D) block     (bs sublanes, D lanes)
    # pe_ref        : (1,  bs, D) block     broadcast over the batch-block dim
    # Pure VPU elementwise add; output block aliases the input block's HBM.
    o_ref[...] = x_ref[...] + pe_ref[...]
    # TODO(synk): training-mode dropout (p>0) would fuse here via
    # pltpu.prng_seed + pltpu.prng_random_bits + jnp.where; eval mode is identity.


def _choose_blocks(b, s, d, itemsize, target_block_bytes=4 * 1024 * 1024):
    """Pick (batch_rows, seq_rows) per block.

    seq_rows lives on the sublane axis -> multiple of 8 (or the full extent for
    tiny / ragged S); d_model stays whole on the lane axis.  Block bytes are
    capped so the double-buffered (x + pe + out) footprint stays within every
    generation's scoped-VMEM default (v7x is the tightest at ~32 MiB).
    """
    bb = min(b, 8)
    if s <= 8 or s % 8 != 0:
        bs = s                                  # tiny / ragged: one full block
    else:
        rows = max(8, target_block_bytes // (bb * d * itemsize))
        bs = min(s, (rows // 8) * 8)
        while s % bs != 0:                      # keep every block full
            bs -= 8
    return bb, bs


def _pe_forward(x, pe):
    """x: (B, S, D), pe: (1, max_len, D) -> (B, S, D).  x is donated/aliased."""
    b, s, d = x.shape
    pe_s = pe[:, :s, :]                         # slice the buffer to seq length
    bb, bs = _choose_blocks(b, s, d, x.dtype.itemsize)
    grid = (s // bs, pl.cdiv(b, bb))            # (seq tiles, batch tiles)

    return pl.pallas_call(
        pe_add_kernel,
        out_shape=jax.ShapeDtypeStruct((b, s, d), x.dtype),
        grid=grid,
        in_specs=[
            # x: block indexed by (batch tile, seq tile)
            pl.BlockSpec((bb, bs, d), lambda si, bi: (bi, si, 0)),
            # pe: depends only on the seq tile -> fetched once per seq tile and
            # reused across the inner batch-tile loop.
            pl.BlockSpec((1, bs, d), lambda si, bi: (0, si, 0)),
        ],
        out_specs=pl.BlockSpec((bb, bs, d), lambda si, bi: (bi, si, 0)),
        input_output_aliases={0: 0},            # out reuses x's HBM buffer
        compiler_params=pltpu.CompilerParams(
            dimension_semantics=("parallel", "parallel")),
    )(x, pe_s)


# Donate x so the pallas_call-level aliasing actually reuses the caller buffer.
positional_encoding_forward = jax.jit(_pe_forward, donate_argnums=(0,))


def reference_forward(x, pe):
    """Pure-JAX reference mirroring the PyTorch forward (eval mode)."""
    return x + pe[:, : x.shape[1], :]


if __name__ == "__main__":
    key = jax.random.PRNGKey(0)
    x = jax.random.normal(key, (B, S, D), jnp.float32)
    pe = make_pe(MAX_LEN, D)

    # Compute the reference BEFORE the kernel call: x is donated to the kernel.
    ref = jax.block_until_ready(reference_forward(x, pe))

    out = positional_encoding_forward(x, pe)
    out = jax.block_until_ready(out)

    assert out.shape == (B, S, D)
    assert jnp.allclose(out, ref, atol=1e-6, rtol=1e-6), "mismatch vs JAX reference"
    print("KERNEL_OK")
</pallas_src>

<mosaic_0001>
module attributes {stable_mosaic.version = 11 : i64} {
  func.func @pe_add_kernel(%arg0: i32, %arg1: i32, %arg2: memref<2x8x32xf32, #tpu.memory_space<vmem>>, %arg3: memref<1x8x32xf32, #tpu.memory_space<vmem>>, %arg4: memref<2x8x32xf32, #tpu.memory_space<vmem>>) attributes {dimension_semantics = [#tpu.dimension_semantics<parallel>, #tpu.dimension_semantics<parallel>], iteration_bounds = array<i64: 1, 1>, scalar_prefetch = 0 : i64, scratch_operands = 0 : i64, tpu.core_type = #tpu.core_type<tc>, window_params = [{transform_indices = @transform_0, window_bounds = array<i64: 2, 8, 32>}, {transform_indices = @transform_1, window_bounds = array<i64: 1, 8, 32>}, {transform_indices = @transform_2, window_bounds = array<i64: 2, 8, 32>}]} {
    %c0 = arith.constant 0 : index
    %c0_0 = arith.constant 0 : index
    %c0_1 = arith.constant 0 : index
    %0 = vector.load %arg2[%c0, %c0_0, %c0_1] : memref<2x8x32xf32, #tpu.memory_space<vmem>>, vector<2x8x32xf32>
    %c0_2 = arith.constant 0 : index
    %c0_3 = arith.constant 0 : index
    %c0_4 = arith.constant 0 : index
    %1 = vector.load %arg3[%c0_2, %c0_3, %c0_4] : memref<1x8x32xf32, #tpu.memory_space<vmem>>, vector<1x8x32xf32>
    %2 = vector.broadcast %1 : vector<1x8x32xf32> to vector<2x8x32xf32>
    %3 = arith.addf %0, %2 : vector<2x8x32xf32>
    %c0_5 = arith.constant 0 : index
    %c0_6 = arith.constant 0 : index
    %c0_7 = arith.constant 0 : index
    %4 = vector.load %arg4[%c0_5, %c0_6, %c0_7] : memref<2x8x32xf32, #tpu.memory_space<vmem>>, vector<2x8x32xf32>
    tpu.vector_store %arg4[%c0_5, %c0_6, %c0_7], %3 {strides = array<i32>} : memref<2x8x32xf32, #tpu.memory_space<vmem>>, vector<2x8x32xf32>,
    return
  }
  func.func @transform_0(%arg0: i32, %arg1: i32) -> (i32, i32, i32) {
    %c0_i32 = arith.constant 0 : i32
    %c0_i32_0 = arith.constant 0 : i32
    return %arg1, %arg0, %c0_i32 : i32, i32, i32
  }
  func.func @transform_1(%arg0: i32, %arg1: i32) -> (i32, i32, i32) {
    %c0_i32 = arith.constant 0 : i32
    %c0_i32_0 = arith.constant 0 : i32
    %c0_i32_1 = arith.constant 0 : i32
    return %c0_i32, %arg0, %c0_i32_0 : i32, i32, i32
  }
  func.func @transform_2(%arg0: i32, %arg1: i32) -> (i32, i32, i32) {
    %c0_i32 = arith.constant 0 : i32
    %c0_i32_0 = arith.constant 0 : i32
    return %arg1, %arg0, %c0_i32 : i32, i32, i32
  }
}

</mosaic_0001>

<bundles_post_ra>
// kernel: _pe_forward.1
= control target key start
LH: loop header
LB: loop body
LE: loop exit
PB: predicated region body
PF: predicated region fallthrough
CT: control target
= control target key end

     0   :  { %7 = vsyncpa [#allocation3], 0  ;;  %s155_s0 = inlined_call_operand.hbm [shape: f32[2,8,32], index: 0, kind: input, shape index: {}, may-alias: {0,2}]   ;;  %s156_s1 = inlined_call_operand.vmem [shape: f32[1,8,32], index: 1, kind: input, shape index: {}]   ;;  %s157_s2 = inlined_call_operand.hbm [shape: f32[2,8,32], index: 2, kind: output, shape index: {}, may-alias: {0,2}]  }
   0x1   :  { %8 = vsyncpa [#allocation4], 0  ;;  %s103_s9 = smov [#allocation2]   ;;  %s55_s13 = scalar_lea.hbm %s155_s0, 256 }
   0x2   :  { %s14_s10 = sshll.u32 %s103_s9, 4  ;;  %p56_p0 = scmp.ne.s32.totalorder %s155_s0, %s55_s13  ;;  %s15_s10 = int_to_ptr.vmem [resolvable:$true] %s14_s10 }
   0x3   :  { %p59_p1 = scmp.lt.u32.totalorder %s55_s13, %s155_s0 }
   0x5   :  { %p61_p2 = pnand %p59_p1, %p56_p0 }
   0x7   :  { %64 = shalt.err (!%p61_p2)
}
   0x8   :  { %s65_s18 = scalar_lea.vmem %s15_s10, 256  ;;  %p70_p4 = scmp.lt.s32.totalorder %s15_s10, %s15_s10 }
   0x9   :  { %p66_p3 = scmp.ne.s32.totalorder %s15_s10, %s65_s18  ;;  %p71_p5 = scmp.lt.s32.totalorder %s65_s18, %s65_s18 }
   0xb   :  { %p72_p6 = por %p71_p5, %p70_p4 }
   0xd   :  { %p73_p7 = pnand %p72_p6, %p66_p3 }
   0xf   :  { %76 = shalt.err (!%p73_p7)
}
  0x10   :  { %s104_s19 = smov 128   ;;  %s105_s20 = smov 8  }
  0x11   :  { %20 = dma.hbm_to_vmem [thread:$0]  %s155_s0, 256, %s15_s10, [#allocation3], %s104_s19, %s104_s19, %s105_s20  }
  0x12   :  { %99 = dma.done.wait [#allocation3], 256  }
  0x13   :  { %100 = vsyncadd [#allocation3], 4294967040  ;;  %s106_s23 = smov [#allocation5]   ;;  %v26_v0 = vld [vmem:[#allocation2] sm:$0xff]  ;;  %vm31_vm0 = vcmask 261120   ;;  %v27_v2 = vld [vmem:[#allocation2 + $0x8] sm:$0xff] }
  0x14   :  { %s39_s24 = sshll.u32 %s106_s23, 4  ;;  %v28_v1 = vld [vmem:[%s156_s1] sm:$0xff]  ;;  %s40_s24 = int_to_ptr.vmem [resolvable:$true] %s39_s24 }
  0x15   :  { %v29_v3 = vadd.f32 %v28_v1, %v26_v0  ;;  %v30_v4 = vadd.f32 %v28_v1, %v27_v2  ;;  %s77_s27 = scalar_lea.vmem %s40_s24, 256  ;;  %p82_p9 = scmp.lt.s32.totalorder %s40_s24, %s40_s24 }
  0x16   :  { %p78_p8 = scmp.ne.s32.totalorder %s40_s24, %s77_s27  ;;  %p83_p10 = scmp.lt.s32.totalorder %s77_s27, %s77_s27 }
  0x17   :  { %32 = vst.msk [vmem:[#allocation5] sm:$0xff] %vm31_vm0, %v29_v3  ;;  %33 = vst.msk [vmem:[#allocation5 + $0x8] sm:$0xff] %vm31_vm0, %v30_v4 }
  0x18   :  { %p84_p11 = por %p83_p10, %p82_p9 }
  0x1a   :  { %p85_p12 = pnand %p84_p11, %p78_p8 }
  0x1c   :  { %88 = shalt.err (!%p85_p12)
}
  0x1d   :  { %s89_s29 = scalar_lea.hbm %s157_s2, 256 }
  0x1e   :  { %p90_p13 = scmp.ne.s32.totalorder %s157_s2, %s89_s29  ;;  %p93_p0 = scmp.lt.u32.totalorder %s89_s29, %s157_s2 }
  0x20   :  { %p95_p1 = pnand %p93_p0, %p90_p13 }
  0x22   :  { %98 = shalt.err (!%p95_p1)
}
  0x23   :  { %45 = dma.vmem_to_hbm [thread:$0]  %s40_s24, 256, %s157_s2, [#allocation4], %s104_s19, %s104_s19, %s105_s20  }
  0x24   :  { %101 = dma.done.wait [#allocation4], 256  }
  0x25   :  { %102 = vsyncadd [#allocation4], 4294967040 }
  0x26   :  { %49 = vsyncpa [#allocation3], 1 }
  0x27   :  { %50 = vsyncpa [#allocation4], 1 }

</bundles_post_ra>
